<compile_context>
chip_gen: v6e
topology: v6e:2x2x1
jax: 0.10.0
libtpu: 0.0.40
codegen_flags: <defaults>
</compile_context>

<pallas_src>
import functools

import jax
import jax.numpy as jnp
from jax.experimental import pallas as pl
from jax.experimental.pallas import tpu as pltpu


def _round_up(x, m):
    return ((x + m - 1) // m) * m


# ----------------------------------------------------------------------------
# Kernel: one batch tile of the 3-layer MLP.  Weights live in a single
# pre-padded resident slab (matmul dtype); biases live in a small resident
# f32 buffer.  Offsets/sizes are static (closed over via functools.partial).
# ----------------------------------------------------------------------------
def _actor_kernel(x_ref, slab_ref, bias_ref, means_ref, *,
                  obs_pad, width, offs, matmul_dtype):
    o_w1, o_w2, o_w3 = offs
    mdt = matmul_dtype

    x = x_ref[...].astype(mdt)                               # [TB, obs_pad]

    w1 = slab_ref[o_w1:o_w1 + obs_pad, :]                    # [obs_pad, W]
    w2 = slab_ref[o_w2:o_w2 + width, :]                      # [W, W]
    w3 = slab_ref[o_w3:o_w3 + width, :]                      # [W, W]
    b1 = bias_ref[0:1, :]                                    # [1, W] f32
    b2 = bias_ref[1:2, :]
    b3 = bias_ref[2:3, :]

    # Layer 1: Linear + Tanh (MXU dot, f32 accumulate; elementwise in f32).
    h1 = jnp.tanh(jnp.dot(x, w1, preferred_element_type=jnp.float32) + b1)
    # Layer 2: Linear + Tanh.
    h2 = jnp.tanh(jnp.dot(h1.astype(mdt), w2, preferred_element_type=jnp.float32) + b2)
    # Layer 3: Linear (means head).  Padded lanes (>= num_action) are exactly 0.
    means = jnp.dot(h2.astype(mdt), w3, preferred_element_type=jnp.float32) + b3
    means_ref[...] = means.astype(means_ref.dtype)


# ----------------------------------------------------------------------------
# Parameter packing.
#   * Weights w1/w2/w3 -> one slab [slab_rows, width] in matmul_dtype, rows
#     padded to multiples of `row_align` (16 for bf16, 8 for f32) so every
#     static slice is tile-aligned.
#   * Biases b1/b2/b3 -> small f32 buffer [8, width] (rows 0..2), never
#     quantized to the matmul dtype.
# Zero padding is numerically inert for the padded lanes.
# ----------------------------------------------------------------------------
def pack_params(params, matmul_dtype=jnp.float32):
    w1, b1, w2, b2, w3, b3, logstds = params
    obs, hid = w1.shape
    act = w3.shape[1]

    row_align = 16 if jnp.dtype(matmul_dtype).itemsize < 4 else 8
    width = _round_up(max(hid, act), 128)
    obs_pad = _round_up(obs, row_align)

    def pad2d(a, rows, cols):
        a = jnp.asarray(a, jnp.float32)
        if a.ndim == 1:
            a = a[None, :]
        return jnp.pad(a, ((0, rows - a.shape[0]), (0, cols - a.shape[1])))

    # Weight slab (matmul dtype).
    w_pieces = [(w1, obs_pad), (w2, width), (w3, width)]
    padded, offs, cur = [], [], 0
    for a, rows in w_pieces:
        padded.append(pad2d(a, rows, width))
        offs.append(cur)
        cur += rows
    slab = jnp.concatenate(padded, axis=0).astype(matmul_dtype)   # [slab_rows, W]

    # Bias buffer (always f32).
    biases = jnp.concatenate(
        [pad2d(b1, 1, width), pad2d(b2, 1, width), pad2d(b3, 1, width),
         jnp.zeros((5, width), jnp.float32)], axis=0)             # [8, W] f32

    meta = {
        "obs": obs, "obs_pad": obs_pad, "hidden": hid, "act": act,
        "width": width, "offs": tuple(offs), "slab_rows": cur,
        "row_align": row_align, "matmul_dtype": jnp.dtype(matmul_dtype),
    }
    return slab, biases, jnp.asarray(logstds, jnp.float32), meta


# ----------------------------------------------------------------------------
# Forward wrapper (always the Pallas path).
# ----------------------------------------------------------------------------
def continuous_actor_forward(x, slab, biases, logstds, meta,
                             out_dtype=None, block_batch_cap=1024,
                             min_grid_steps=1, slice_output=True):
    batch, obs = x.shape
    obs_pad, width, act = meta["obs_pad"], meta["width"], meta["act"]
    slab_rows, offs = meta["slab_rows"], meta["offs"]
    row_align = meta["row_align"]
    mdt = meta["matmul_dtype"]
    if out_dtype is None:
        out_dtype = x.dtype

    # Waste-aware batch tiling: as few grid steps as possible (per-step
    # overhead ~0.35 us dwarfs the per-tile work for this tiny MLP), but at
    # least `min_grid_steps` so v7x megacore can shard the grid, and block
    # rows aligned to the dtype's sublane packing.
    steps = max(pl.cdiv(batch, block_batch_cap), min_grid_steps)
    block_batch = _round_up(pl.cdiv(batch, steps), row_align)
    batch_pad = steps * block_batch

    x_p = x
    if batch_pad != batch or obs_pad != obs:
        x_p = jnp.pad(x, ((0, batch_pad - batch), (0, obs_pad - obs)))
    x_p = x_p.astype(mdt)

    kernel = functools.partial(
        _actor_kernel, obs_pad=obs_pad, width=width, offs=offs,
        matmul_dtype=mdt)

    mdt_size = jnp.dtype(mdt).itemsize
    out_size = jnp.dtype(out_dtype).itemsize
    cost = pl.CostEstimate(
        flops=2 * batch_pad * (obs_pad * width + 2 * width * width),
        transcendentals=2 * batch_pad * width,                 # two tanh layers
        bytes_accessed=(batch_pad * obs_pad * mdt_size
                        + slab_rows * width * mdt_size
                        + 8 * width * 4
                        + batch_pad * width * out_size),
    )

    means_pad = pl.pallas_call(
        kernel,
        out_shape=jax.ShapeDtypeStruct((batch_pad, width), out_dtype),
        grid=(steps,),
        in_specs=[
            pl.BlockSpec((block_batch, obs_pad), lambda i: (i, 0)),  # x: blocked rows
            pl.BlockSpec((slab_rows, width), lambda i: (0, 0)),      # weights: resident
            pl.BlockSpec((8, width), lambda i: (0, 0)),              # biases: resident f32
        ],
        out_specs=pl.BlockSpec((block_batch, width), lambda i: (i, 0)),  # lane-dense
        compiler_params=pltpu.CompilerParams(
            dimension_semantics=("parallel",)),                      # megacore on v7x
        cost_estimate=cost,
    )(x_p, slab, biases)

    # stds: parameter-only math hoisted out of the kernel, kept in f32 (the
    # 0.0007 lower clamp loses meaning in bf16).  Broadcasts over batch like
    # torch.distributions.Normal.
    stds = jnp.clip(jnp.exp(logstds), 0.0007, 50.0)

    if not slice_output:
        # Lane-dense padded result: real means are [:batch, :act]; rows >= batch
        # contain tanh(b1)-derived garbage and lanes >= act are exactly zero.
        return means_pad, stds
    return means_pad[:batch, :act], stds


# ----------------------------------------------------------------------------
# Dispatcher: tiny inference batches are faster on the fused plain-JAX path
# (pallas_call overhead + padding dominates below ~128 rows).
# ----------------------------------------------------------------------------
def actor_apply(x, params, packed, small_batch_threshold=128, **kwargs):
    if x.shape[0] < small_batch_threshold:
        return reference_forward(x, params)
    slab, biases, logstds, meta = packed
    return continuous_actor_forward(x, slab, biases, logstds, meta, **kwargs)


# ----------------------------------------------------------------------------
# Deterministic synthetic init (stand-in for torch's default Linear init).
# Weights stored pre-transposed as [in_features, out_features].
# ----------------------------------------------------------------------------
def init_params(key, observation_dim, num_action, hidden_size=64):
    k1, k2, k3 = jax.random.split(key, 3)

    def linear(k, fan_in, fan_out):
        bound = 1.0 / jnp.sqrt(fan_in)
        kw, kb = jax.random.split(k)
        w = jax.random.uniform(kw, (fan_in, fan_out), jnp.float32, -bound, bound)
        b = jax.random.uniform(kb, (fan_out,), jnp.float32, -bound, bound)
        return w, b

    w1, b1 = linear(k1, observation_dim, hidden_size)
    w2, b2 = linear(k2, hidden_size, hidden_size)
    w3, b3 = linear(k3, hidden_size, num_action)
    logstds = jnp.full((num_action,), 0.1, dtype=jnp.float32)
    return (w1, b1, w2, b2, w3, b3, logstds)


def reference_forward(x, params):
    """Plain-JAX reference of the same math."""
    w1, b1, w2, b2, w3, b3, logstds = params
    h = jnp.tanh(x @ w1 + b1)
    h = jnp.tanh(h @ w2 + b2)
    means = h @ w3 + b3
    stds = jnp.clip(jnp.exp(logstds), 0.0007, 50.0)
    return means, stds


if __name__ == "__main__":
    key = jax.random.PRNGKey(0)
    observation_dim = 16
    num_action = 4
    hidden_size = 64

    kx, kx2, kp = jax.random.split(key, 3)
    params = init_params(kp, observation_dim, num_action, hidden_size)

    # ---- Pallas path, batch=300 (non-multiple-of-tile: exercises waste-aware
    # ---- tiling -> 2 steps of 160 rows, batch_pad=320 instead of 512).
    batch = 300
    x = jax.random.normal(kx, (batch, observation_dim), dtype=jnp.float32)
    ref_means, ref_stds = reference_forward(x, params)

    # f32 MXU path (exact parity with the PyTorch f32 module).
    slab32, bias32, logstds32, meta32 = pack_params(params, jnp.float32)
    means, stds = jax.block_until_ready(
        continuous_actor_forward(x, slab32, bias32, logstds32, meta32,
                                 min_grid_steps=2))
    assert means.shape == (batch, num_action)
    assert stds.shape == (num_action,)
    assert jnp.allclose(means, ref_means, atol=1e-3, rtol=1e-3)
    assert jnp.allclose(stds, ref_stds, atol=1e-6, rtol=1e-6)

    # bf16 MXU-input path (recommended on v5e/v6e/v7x): weights + x in bf16,
    # f32 accumulate, biases/tanh/store in f32.
    slab16, bias16, logstds16, meta16 = pack_params(params, jnp.bfloat16)
    means_bf, stds_bf = jax.block_until_ready(
        continuous_actor_forward(x, slab16, bias16, logstds16, meta16,
                                 min_grid_steps=2))
    assert means_bf.shape == (batch, num_action)
    assert bool(jnp.all(jnp.isfinite(means_bf)))
    assert jnp.allclose(means_bf, ref_means, atol=1e-1, rtol=1e-1)
    assert jnp.allclose(stds_bf, ref_stds, atol=1e-6, rtol=1e-6)

    # No-slice mode (lane-dense padded output, no extra XLA slice pass) with a
    # bf16 output store -> minimal output HBM traffic.
    means_pad, _ = jax.block_until_ready(
        continuous_actor_forward(x, slab16, bias16, logstds16, meta16,
                                 out_dtype=jnp.bfloat16, min_grid_steps=2,
                                 slice_output=False))
    assert means_pad.shape[1] == 128 and means_pad.shape[0] >= batch
    assert jnp.allclose(means_pad[:batch, :num_action].astype(jnp.float32),
                        ref_means, atol=1e-1, rtol=1e-1)

    # ---- Small-batch dispatch (batch=8): plain-JAX path, no padding traffic.
    x_small = jax.random.normal(kx2, (8, observation_dim), dtype=jnp.float32)
    m_s, s_s = jax.block_until_ready(
        actor_apply(x_small, params, (slab32, bias32, logstds32, meta32)))
    rm_s, rs_s = reference_forward(x_small, params)
    assert jnp.allclose(m_s, rm_s) and jnp.allclose(s_s, rs_s)

    # TODO(synk): torch.distributions.Normal has no Pallas equivalent; we return
    # (means, stds), which fully parameterize the same distribution.  The Adam
    # optimizer in the module is training-time state, not part of forward().
    print("KERNEL_OK")
</pallas_src>

<mosaic_0001>
module attributes {stable_mosaic.version = 11 : i64} {
  func.func @_actor_kernel(%arg0: i32, %arg1: memref<152x16xf32, #tpu.memory_space<vmem>>, %arg2: memref<272x128xf32, #tpu.memory_space<vmem>>, %arg3: memref<8x128xf32, #tpu.memory_space<vmem>>, %arg4: memref<152x128xf32, #tpu.memory_space<vmem>>) attributes {dimension_semantics = [#tpu.dimension_semantics<parallel>], iteration_bounds = array<i64: 2>, scalar_prefetch = 0 : i64, scratch_operands = 0 : i64, tpu.core_type = #tpu.core_type<tc>, window_params = [{transform_indices = @transform_0, window_bounds = array<i64: 152, 16>}, {pipeline_mode = #tpu.pipeline_mode<synchronous>, transform_indices = @transform_1, window_bounds = array<i64: 272, 128>}, {pipeline_mode = #tpu.pipeline_mode<synchronous>, transform_indices = @transform_2, window_bounds = array<i64: 8, 128>}, {transform_indices = @transform_3, window_bounds = array<i64: 152, 128>}]} {
    %c0 = arith.constant 0 : index
    %c0_0 = arith.constant 0 : index
    %0 = vector.load %arg1[%c0, %c0_0] : memref<152x16xf32, #tpu.memory_space<vmem>>, vector<152x16xf32>
    %c0_1 = arith.constant 0 : index
    %c0_2 = arith.constant 0 : index
    %1 = vector.load %arg2[%c0_1, %c0_2] : memref<272x128xf32, #tpu.memory_space<vmem>>, vector<16x128xf32>
    %c16 = arith.constant 16 : index
    %c0_3 = arith.constant 0 : index
    %2 = vector.load %arg2[%c16, %c0_3] : memref<272x128xf32, #tpu.memory_space<vmem>>, vector<128x128xf32>
    %c144 = arith.constant 144 : index
    %c0_4 = arith.constant 0 : index
    %3 = vector.load %arg2[%c144, %c0_4] : memref<272x128xf32, #tpu.memory_space<vmem>>, vector<128x128xf32>
    %c0_5 = arith.constant 0 : index
    %c0_6 = arith.constant 0 : index
    %4 = vector.load %arg3[%c0_5, %c0_6] : memref<8x128xf32, #tpu.memory_space<vmem>>, vector<1x128xf32>
    %c1 = arith.constant 1 : index
    %c0_7 = arith.constant 0 : index
    %5 = vector.load %arg3[%c1, %c0_7] : memref<8x128xf32, #tpu.memory_space<vmem>>, vector<1x128xf32>
    %c2 = arith.constant 2 : index
    %c0_8 = arith.constant 0 : index
    %6 = vector.load %arg3[%c2, %c0_8] : memref<8x128xf32, #tpu.memory_space<vmem>>, vector<1x128xf32>
    %cst = arith.constant dense<0.000000e+00> : vector<152x128xf32>
    %7 = tpu.matmul %0, %1, %cst {dimension_numbers = #tpu.dot_dimension_numbers<[1], [0], [0], [1], [0, 0, 1, 1], [], []>} : vector<152x16xf32>, vector<16x128xf32>, vector<152x128xf32> -> vector<152x128xf32>
    %8 = vector.broadcast %4 : vector<1x128xf32> to vector<152x128xf32>
    %9 = arith.addf %7, %8 : vector<152x128xf32>
    %10 = math.tanh %9 : vector<152x128xf32>
    %cst_9 = arith.constant dense<0.000000e+00> : vector<152x128xf32>
    %11 = tpu.matmul %10, %2, %cst_9 {dimension_numbers = #tpu.dot_dimension_numbers<[1], [0], [0], [1], [0, 0, 1, 1], [], []>} : vector<152x128xf32>, vector<128x128xf32>, vector<152x128xf32> -> vector<152x128xf32>
    %12 = vector.broadcast %5 : vector<1x128xf32> to vector<152x128xf32>
    %13 = arith.addf %11, %12 : vector<152x128xf32>
    %14 = math.tanh %13 : vector<152x128xf32>
    %cst_10 = arith.constant dense<0.000000e+00> : vector<152x128xf32>
    %15 = tpu.matmul %14, %3, %cst_10 {dimension_numbers = #tpu.dot_dimension_numbers<[1], [0], [0], [1], [0, 0, 1, 1], [], []>} : vector<152x128xf32>, vector<128x128xf32>, vector<152x128xf32> -> vector<152x128xf32>
    %16 = vector.broadcast %6 : vector<1x128xf32> to vector<152x128xf32>
    %17 = arith.addf %15, %16 : vector<152x128xf32>
    %c0_11 = arith.constant 0 : index
    %c0_12 = arith.constant 0 : index
    %18 = vector.load %arg4[%c0_11, %c0_12] : memref<152x128xf32, #tpu.memory_space<vmem>>, vector<152x128xf32>
    tpu.vector_store %arg4[%c0_11, %c0_12], %17 {strides = array<i32>} : memref<152x128xf32, #tpu.memory_space<vmem>>, vector<152x128xf32>,
    return
  }
  func.func @transform_0(%arg0: i32) -> (i32, i32) {
    %c0_i32 = arith.constant 0 : i32
    %c0_i32_0 = arith.constant 0 : i32
    return %arg0, %c0_i32 : i32, i32
  }
  func.func @transform_1(%arg0: i32) -> (i32, i32) {
    %c0_i32 = arith.constant 0 : i32
    %c0_i32_0 = arith.constant 0 : i32
    %c0_i32_1 = arith.constant 0 : i32
    return %c0_i32, %c0_i32_0 : i32, i32
  }
  func.func @transform_2(%arg0: i32) -> (i32, i32) {
    %c0_i32 = arith.constant 0 : i32
    %c0_i32_0 = arith.constant 0 : i32
    %c0_i32_1 = arith.constant 0 : i32
    return %c0_i32, %c0_i32_0 : i32, i32
  }
  func.func @transform_3(%arg0: i32) -> (i32, i32) {
    %c0_i32 = arith.constant 0 : i32
    %c0_i32_0 = arith.constant 0 : i32
    return %arg0, %c0_i32 : i32, i32
  }
}

</mosaic_0001>

<bundles_post_ra>
// kernel: tpu_custom_call.1
= control target key start
LH: loop header
LB: loop body
LE: loop exit
PB: predicated region body
PF: predicated region fallthrough
CT: control target
= control target key end

     0   :  { %8 = vsyncpa [#allocation3], 0  ;;  %s1989_s0 = inlined_call_operand.vmem [shape: f32[304,16], index: 0, kind: input, shape index: {}]   ;;  %s1990_s1 = inlined_call_operand.vmem [shape: f32[272,128], index: 1, kind: input, shape index: {}]   ;;  %s1991_s2 = inlined_call_operand.vmem [shape: f32[8,128], index: 2, kind: input, shape index: {}]   ;;  %s1992_s3 = inlined_call_operand.hbm [shape: f32[304,128], index: 3, kind: output, shape index: {}]  }
   0x1   :  { %10 = vsyncpa [#allocation3 + $0x1], 0  ;;  %s1483_s12 = smov 0   ;;  %s1485_s13 = smov 0  }
   0x2   :  { %s1487_s14 = smov 0   ;;  %s1489_s15 = smov 0  }
   0x3 LB: > { %s1504_s16 = sadd.s32 4294967295, %s1456_s15   ;;  %s911_s17 = sadd.s32 4294967294, %s1456_s15   ;;  %s1456_s15 = sphi %s1489_s15, %s1998_s15   ;;  %s1452_s14 = sphi %s1487_s14, %s1997_s14   ;;  %s1448_s13 = sphi %s1485_s13, %s1996_s13   ;;  %s1444_s12 = sphi %s1483_s12, %s1995_s12  }
   0x4   : > { %s1508_s18 = sadd.s32 1, %s1456_s15   ;;  %s91_s19 = sadd.s32 1, %s1452_s14 }
   0x5   : > { %s88_s20 = ssub.s32 %s1456_s15, %s1508_s18  ;;  %p101_p0 = scmp.ne.s32.totalorder %s1452_s14, %s1448_s13 }
   0x6   : > { %p89_p1 = scmp.eq.s32.totalorder %s88_s20, 0  ;;  %p102_p2 = scmp.eq.s32.totalorder %s1504_s16, 1 }
   0x7   : > { %p107_p3 = scmp.ne.s32.totalorder %s1448_s13, %s1444_s12  ;;  %p108_p4 = scmp.eq.s32.totalorder %s911_s17, 1 }
   0x8   : > { %s1519_s21 = scalar_select %p89_p1, %s1452_s14, %s91_s19  }
   0x9   : > { %p1521_p5 = por %p102_p2, %p101_p0  ;;  %p1525_p6 = por %p108_p4, %p107_p3 }
   0xa   : > { %p914_p7 = scmp.ge.s32.totalorder %s1456_s15, 1  ;;  %p141_p8 = scmp.lt.s32.totalorder %s1456_s15, 3 }
   0xc   : > { %p142_p9 = pnand %p914_p7, %p141_p8 }
   0xd   : > { %s165_s26 = smul.u32 (!%p142_p9), 19, %s1504_s16  ;;  %s1460_s19 = smov (!%p142_p9), [#allocation2]  }
   0xe   : > { %145 = sbr.rel (%p142_p9) target bundleno = 725 (0x2d5), region = 32  ;;  %s1400_s20 = sshll.u32 (!%p142_p9), %s1460_s19, 4  ;;  %s1401_s20 = int_to_ptr.vmem [resolvable:$false] %s1400_s20 }
   0xf   : > { %p166_p10 = scmp.lt.s32.totalorder (!%p142_p9), %s165_s26, 37  ;;  %s941_s7 = smul.u32 (!%p142_p9), 2432, %s1504_s16 }
  0x10   : > { %s1402_s24 = scalar_lea.vmem (!%p142_p9), %s1401_s20, 4864 }
  0x11   : > { %s1941_s11 = scalar_lea.hbm (!%p142_p9), %s1992_s3, %s941_s7 }
  0x13   : > { %v192_v0 = vld [vmem:[%s1990_s1 + $0x8] sm:$0xff]  ;;  %v1458_v1 = vmov 0.0   ;;  %v191_v2 = vld [vmem:[%s1990_s1] sm:$0xff]  ;;  %vm1459_vm0 = vmmov 0   ;;  %s2000_s26 = smov (!%p166_p10, %s165_s26), 37  ;;  %vm232_vm1 = vcmask 130048  }
  0x14   : > { %1033 = vmatprep.subr.mxu0 %v1458_v1  ;;  %1037 = vmatprep.mubr.msk.f32.mxu0 %vm1459_vm0, %v1458_v1  ;;  %s915_s29 = sshll.u32 %s2000_s26, 3  ;;  %v208_v6 = vld [vmem:[%s1990_s1 + $0x88] sm:$0xff]  ;;  %v207_v9 = vld [vmem:[%s1990_s1 + $0x80] sm:$0xff]  ;;  %v206_v12 = vld [vmem:[%s1990_s1 + $0x78] sm:$0xff] }
  0x15   : > { %1034 = vmatpush3.msra.mxu0 %v192_v0  ;;  %1272 = vmatprep.subr.mxu1 %v1458_v1  ;;  %s1551_s5 = scalar_lea.vmem %s1989_s0, %s915_s29  ;;  %v205_v15 = vld [vmem:[%s1990_s1 + $0x70] sm:$0xff]  ;;  %v204_v18 = vld [vmem:[%s1990_s1 + $0x68] sm:$0xff]  ;;  %v203_v21 = vld [vmem:[%s1990_s1 + $0x60] sm:$0xff]  ;;  %s162_s29 = sand.u32 1, %s1448_s13  }
  0x16   : > { %1035 = vmatprep.subr.mxu0 %v1458_v1  ;;  %1274 = vmatpush3.msra.mxu1 %v192_v0  ;;  %v172_v3 = vld [vmem:[%s1551_s5] sm:$0xff]  ;;  %v173_v4 = vld [vmem:[%s1551_s5 + $0x8] sm:$0xff]  ;;  %v182_v5 = vld [vmem:[%s1551_s5 + $0x50] sm:$0xff]  ;;  %s1276_s30 = smul.u32 152, %s162_s29  ;;  %s1949_s16 = scalar_lea.sflag [#allocation3], %s162_s29 }
  0x17   : > { %1036 = vmatpush3.msra.mxu0 %v191_v2  ;;  %1273 = vmatprep.subr.mxu1 %v1458_v1  ;;  %v183_v7 = vld [vmem:[%s1551_s5 + $0x58] sm:$0xff]  ;;  %v174_v8 = vld [vmem:[%s1551_s5 + $0x10] sm:$0xff]  ;;  %v184_v10 = vld [vmem:[%s1551_s5 + $0x60] sm:$0xff] }
  0x18   : > { %1275 = vmatpush3.msra.mxu1 %v191_v2  ;;  %1067 = vmatprep.mubr.msk.f32.mxu1 %vm1459_vm0, %v1458_v1  ;;  %v175_v11 = vld [vmem:[%s1551_s5 + $0x18] sm:$0xff]  ;;  %v185_v13 = vld [vmem:[%s1551_s5 + $0x68] sm:$0xff]  ;;  %v176_v14 = vld [vmem:[%s1551_s5 + $0x20] sm:$0xff] }
  0x19   : > { %1094 = vmatprep.subr.mxu1 %v1458_v1  ;;  %1183 = vmatprep.subr.mxu0 %v1458_v1  ;;  %v186_v16 = vld [vmem:[%s1551_s5 + $0x70] sm:$0xff]  ;;  %v177_v17 = vld [vmem:[%s1551_s5 + $0x28] sm:$0xff]  ;;  %v187_v19 = vld [vmem:[%s1551_s5 + $0x78] sm:$0xff] }
  0x1a   : > { %1038 = vmatmul.mubr.msk.f32.vlgmr.msra.gmra.mxu0 %vm232_vm1, %v172_v3  ;;  %1068 = vmatmul.mubr.msk.f32.vlgmr.msra.gmra.mxu1 %vm232_vm1, %v182_v5  ;;  %v178_v20 = vld [vmem:[%s1551_s5 + $0x30] sm:$0xff]  ;;  %v188_v22 = vld [vmem:[%s1551_s5 + $0x80] sm:$0xff]  ;;  %v179_v23 = vld [vmem:[%s1551_s5 + $0x38] sm:$0xff] }
  0x1b   : > { %1040 = vmatprep.mubr.msk.f32.mxu0 %vm1459_vm0, %v1458_v1  ;;  %1070 = vmatprep.mubr.msk.f32.mxu1 %vm1459_vm0, %v1458_v1  ;;  %v202_v24 = vld [vmem:[%s1990_s1 + $0x58] sm:$0xff]  ;;  %v189_v25 = vld [vmem:[%s1551_s5 + $0x88] sm:$0xff]  ;;  %v180_v26 = vld [vmem:[%s1551_s5 + $0x40] sm:$0xff] }
  0x1c   : > { %1095 = vmatpush3.msra.mxu1 %v208_v6  ;;  %v201_v27 = vld [vmem:[%s1990_s1 + $0x50] sm:$0xff]  ;;  %v181_v29 = vld [vmem:[%s1551_s5 + $0x48] sm:$0xff]  ;;  %v199_v31 = vld [vmem:[%s1990_s1 + $0x40] sm:$0xff] }
  0x1d   : > { %1096 = vmatprep.subr.mxu1 %v1458_v1  ;;  %v190_v28 = vld [vmem:[%s1551_s5 + $0x90] sm:$0xff]  ;;  %v200_v30 = vld [vmem:[%s1990_s1 + $0x48] sm:$0xff]  ;;  %v198_v32 = vld [vmem:[%s1990_s1 + $0x38] sm:$0xff]  ;;  %s1899_s5 = scalar_lea.vmem [#allocation2], %s1276_s30 }
  0x1e   : > { %1041 = vmatmul.mubr.msk.f32.gmra.mxu0 %vm232_vm1, %v173_v4  ;;  %1071 = vmatmul.mubr.msk.f32.gmra.mxu1 %vm232_vm1, %v183_v7  ;;  %v197_v33 = vld [vmem:[%s1990_s1 + $0x30] sm:$0xff]  ;;  %v196_v34 = vld [vmem:[%s1990_s1 + $0x28] sm:$0xff]  ;;  %v195_v35 = vld [vmem:[%s1990_s1 + $0x20] sm:$0xff]  ;;  %s849_s8 = sshll.u32 %s1899_s5, 4  ;;  %s1943_s8 = int_to_ptr.vmem [resolvable:$true] %s849_s8 }
  0x1f   : > { %1043 = vmatprep.mubr.msk.f32.mxu0 %vm1459_vm0, %v1458_v1  ;;  %1073 = vmatprep.mubr.msk.f32.mxu1 %vm1459_vm0, %v1458_v1  ;;  %v194_v36 = vld [vmem:[%s1990_s1 + $0x18] sm:$0xff]  ;;  %v193_v37 = vld [vmem:[%s1990_s1 + $0x10] sm:$0xff]  ;;  %v224_v38 = vld [vmem:[%s1990_s1 + $0x108] sm:$0xff]  ;;  %s1396_s17 = scalar_lea.vmem %s1943_s8, 2432  ;;  %p1403_p0 = scmp.lt.s32.totalorder %s1943_s8, %s1401_s20 }
  0x20   : > { %1097 = vmatpush3.msra.mxu1 %v207_v9  ;;  %v223_v39 = vld [vmem:[%s1990_s1 + $0x100] sm:$0xff]  ;;  %1184 = vmatpush3.msra.mxu0 %v224_v38  ;;  %v222_v40 = vld [vmem:[%s1990_s1 + $0xf8] sm:$0xff]  ;;  %v221_v41 = vld [vmem:[%s1990_s1 + $0xf0] sm:$0xff]  ;;  %p1397_p11 = scmp.ne.s32.totalorder %s1943_s8, %s1396_s17  ;;  %p1404_p1 = scmp.lt.s32.totalorder %s1402_s24, %s1396_s17 }
  0x21   : > { %1098 = vmatprep.subr.mxu1 %v1458_v1  ;;  %1185 = vmatprep.subr.mxu0 %v1458_v1  ;;  %v220_v42 = vld [vmem:[%s1990_s1 + $0xe8] sm:$0xff]  ;;  %v219_v43 = vld [vmem:[%s1990_s1 + $0xe0] sm:$0xff]  ;;  %v218_v44 = vld [vmem:[%s1990_s1 + $0xd8] sm:$0xff] }
  0x22   : > { %1044 = vmatmul.mubr.msk.f32.gmra.mxu0 %vm232_vm1, %v174_v8  ;;  %1074 = vmatmul.mubr.msk.f32.gmra.mxu1 %vm232_vm1, %v184_v10  ;;  %v217_v45 = vld [vmem:[%s1990_s1 + $0xd0] sm:$0xff]  ;;  %v216_v46 = vld [vmem:[%s1990_s1 + $0xc8] sm:$0xff]  ;;  %v1731_v47 = vld [vmem:[%s1991_s2] ss:$0 sm:$0xff]  ;;  %p1398_p12 = pnand %p1397_p11, %p1521_p5  ;;  %p1405_p2 = por %p1404_p1, %p1403_p0 }
  0x23   : > { %1046 = vmatprep.mubr.msk.f32.mxu0 %vm1459_vm0, %v1458_v1  ;;  %1076 = vmatprep.mubr.msk.f32.mxu1 %vm1459_vm0, %v1458_v1 }
  0x24   : > { %1099 = vmatpush3.msra.mxu1 %v206_v12  ;;  %1186 = vmatpush3.msra.mxu0 %v223_v39  ;;  %p1399_p13 = pneg %p1398_p12 }
  0x25   : > { %1100 = vmatprep.subr.mxu1 %v1458_v1  ;;  %1187 = vmatprep.subr.mxu0 %v1458_v1 }
  0x26   : > { %1047 = vmatmul.mubr.msk.f32.gmra.mxu0 %vm232_vm1, %v175_v11  ;;  %1077 = vmatmul.mubr.msk.f32.gmra.mxu1 %vm232_vm1, %v185_v13  ;;  %p1406_p3 = pnand %p1405_p2, %p1399_p13 }
  0x27   : > { %1049 = vmatprep.mubr.msk.f32.mxu0 %vm1459_vm0, %v1458_v1  ;;  %1079 = vmatprep.mubr.msk.f32.mxu1 %vm1459_vm0, %v1458_v1 }
  0x28   : > { %1101 = vmatpush3.msra.mxu1 %v205_v15  ;;  %1188 = vmatpush3.msra.mxu0 %v222_v40 }
  0x29   : > { %1102 = vmatprep.subr.mxu1 %v1458_v1  ;;  %1189 = vmatprep.subr.mxu0 %v1458_v1 }
  0x2a   : > { %1050 = vmatmul.mubr.msk.f32.gmra.mxu0 %vm232_vm1, %v176_v14  ;;  %1080 = vmatmul.mubr.msk.f32.gmra.mxu1 %vm232_vm1, %v186_v16 }
  0x2b   : > { %1052 = vmatprep.mubr.msk.f32.mxu0 %vm1459_vm0, %v1458_v1  ;;  %1082 = vmatprep.mubr.msk.f32.mxu1 %vm1459_vm0, %v1458_v1 }
  0x2c   : > { %1103 = vmatpush3.msra.mxu1 %v204_v18  ;;  %1190 = vmatpush3.msra.mxu0 %v221_v41 }
  0x2d   : > { %1104 = vmatprep.subr.mxu1 %v1458_v1  ;;  %1191 = vmatprep.subr.mxu0 %v1458_v1 }
  0x2e   : > { %1053 = vmatmul.mubr.msk.f32.gmra.mxu0 %vm232_vm1, %v177_v17  ;;  %1083 = vmatmul.mubr.msk.f32.gmra.mxu1 %vm232_vm1, %v187_v19 }
  0x2f   : > { %1055 = vmatprep.mubr.msk.f32.mxu0 %vm1459_vm0, %v1458_v1  ;;  %1085 = vmatprep.mubr.msk.f32.mxu1 %vm1459_vm0, %v1458_v1 }
  0x30   : > { %1105 = vmatpush3.msra.mxu1 %v203_v21  ;;  %1192 = vmatpush3.msra.mxu0 %v220_v42 }
  0x31   : > { %1106 = vmatprep.subr.mxu1 %v1458_v1  ;;  %1193 = vmatprep.subr.mxu0 %v1458_v1 }
  0x32   : > { %1056 = vmatmul.mubr.msk.f32.gmra.mxu0 %vm232_vm1, %v178_v20  ;;  %1086 = vmatmul.mubr.msk.f32.gmra.mxu1 %vm232_vm1, %v188_v22 }
  0x33   : > { %1058 = vmatprep.mubr.msk.f32.mxu0 %vm1459_vm0, %v1458_v1  ;;  %1088 = vmatprep.mubr.msk.f32.mxu1 %vm1459_vm0, %v1458_v1 }
  0x34   : > { %1107 = vmatpush3.msra.mxu1 %v202_v24  ;;  %1194 = vmatpush3.msra.mxu0 %v219_v43 }
  0x35   : > { %1108 = vmatprep.subr.mxu1 %v1458_v1  ;;  %1195 = vmatprep.subr.mxu0 %v1458_v1 }
  0x36   : > { %1059 = vmatmul.mubr.msk.f32.gmra.mxu0 %vm232_vm1, %v179_v23  ;;  %1089 = vmatmul.mubr.msk.f32.gmra.mxu1 %vm232_vm1, %v189_v25 }
  0x37   : > { %1061 = vmatprep.mubr.msk.f32.mxu0 %vm1459_vm0, %v1458_v1  ;;  %1091 = vmatprep.mubr.msk.f32.mxu1 %vm1459_vm0, %v1458_v1 }
  0x38   : > { %1109 = vmatpush3.msra.mxu1 %v201_v27  ;;  %1196 = vmatpush3.msra.mxu0 %v218_v44 }
  0x39   : > { %1110 = vmatprep.subr.mxu1 %v1458_v1  ;;  %1197 = vmatprep.subr.mxu0 %v1458_v1 }
  0x3a   : > { %1062 = vmatmul.mubr.msk.f32.gmra.mxu0 %vm232_vm1, %v180_v26  ;;  %1092 = vmatmul.mubr.msk.f32.gmra.mxu1 %vm232_vm1, %v190_v28 }
  0x3b   : > { %1064 = vmatprep.mubr.msk.f32.mxu0 %vm1459_vm0, %v1458_v1  ;;  %1111 = vmatpush3.msra.mxu1 %v200_v30 }
  0x3c   : > { %1112 = vmatprep.subr.mxu1 %v1458_v1  ;;  %1126 = vmatprep.mubr.msk.f32.mxu1 %vm1459_vm0, %v1458_v1 }
  0x3d   : > { %1113 = vmatpush3.msra.mxu1 %v199_v31  ;;  %1198 = vmatpush3.msra.mxu0 %v217_v45 }
  0x3e   : > { %1065 = vmatmul.mubr.msk.f32.gmra.mxu0 %vm232_vm1, %v181_v29  ;;  %1114 = vmatprep.subr.mxu1 %v1458_v1 }
  0x3f   : > { %1215 = vmatprep.mubr.msk.f32.mxu0 %vm1459_vm0, %v1458_v1  ;;  %1115 = vmatpush3.msra.mxu1 %v198_v32 }
  0x40   : > { %1116 = vmatprep.subr.mxu1 %v1458_v1  ;;  %1199 = vmatprep.subr.mxu0 %v1458_v1 }
  0x41   : > { %1117 = vmatpush3.msra.mxu1 %v197_v33  ;;  %1200 = vmatpush3.msra.mxu0 %v216_v46 }
  0x42   : > { %1118 = vmatprep.subr.mxu1 %v1458_v1  ;;  %1201 = vmatprep.subr.mxu0 %v1458_v1 }
  0x43   : > { %1119 = vmatpush3.msra.mxu1 %v196_v34 }
  0x44   : > { %1120 = vmatprep.subr.mxu1 %v1458_v1 }
  0x45   : > { %1121 = vmatpush3.msra.mxu1 %v195_v35 }
  0x46   : > { %1122 = vmatprep.subr.mxu1 %v1458_v1 }
  0x47   : > { %1123 = vmatpush3.msra.mxu1 %v194_v36 }
  0x48   : > { %1124 = vmatprep.subr.mxu1 %v1458_v1 }
  0x49   : > { %1125 = vmatpush3.msra.mxu1 %v193_v37 }
  0xda   : > { %v356_v48 = vpop.f32.mrf.mxu0  ;;  %v1734_v51 = vpop.f32.mrf.mxu1 }
  0xdb   : > { %v357_v49 = vadd.f32 %v1731_v47, %v356_v48  ;;  %v407_v37 = vadd.f32 %v1731_v47, %v1734_v51 }
  0xdc   : > { %v1039_v50 = vpop.f32.mrf.mxu0  ;;  %v1069_v54 = vpop.f32.mrf.mxu1 }
  0xdd   : > { %1320 = vtanh.f32 %v357_v49 }
  0xde   : > { %v361_v52 = vpop.f32.mrf.mxu0  ;;  %v1737_v56 = vpop.f32.mrf.mxu1 }
  0xdf   : > { %v362_v53 = vadd.f32 %v1731_v47, %v361_v52  ;;  %v412_v41 = vadd.f32 %v1731_v47, %v1737_v56 }
  0xe0   : > { %v1042_v55 = vpop.f32.mrf.mxu0  ;;  %v1072_v59 = vpop.f32.mrf.mxu1 }
  0xe1   : > { %1322 = vtanh.f32 %v362_v53 }
  0xe2   : > { %v366_v57 = vpop.f32.mrf.mxu0  ;;  %v1740_v61 = vpop.f32.mrf.mxu1 }
  0xe3   : > { %v367_v58 = vadd.f32 %v1731_v47, %v366_v57  ;;  %v417_v43 = vadd.f32 %v1731_v47, %v1740_v61  ;;  %v214_v61 = vld [vmem:[%s1990_s1 + $0xb8] sm:$0xff] }
  0xe4   : > { %v1045_v60 = vpop.f32.mrf.mxu0  ;;  %v1075_v0 = vpop.f32.mrf.mxu1 }
  0xe5   : > { %1324 = vtanh.f32 %v367_v58  ;;  %v212_v0 = vld [vmem:[%s1990_s1 + $0xa8] sm:$0xff] }
  0xe6   : > { %v371_v62 = vpop.f32.mrf.mxu0  ;;  %v1743_v3 = vpop.f32.mrf.mxu1 }
  0xe7   : > { %v372_v63 = vadd.f32 %v1731_v47, %v371_v62  ;;  %v422_v45 = vadd.f32 %v1731_v47, %v1743_v3  ;;  %v210_v3 = vld [vmem:[%s1990_s1 + $0x98] sm:$0xff] }
  0xe8   : > { %v1048_v2 = vpop.f32.mrf.mxu0  ;;  %v1078_v7 = vpop.f32.mrf.mxu1 }
  0xe9   : > { %1326 = vtanh.f32 %v372_v63  ;;  %v213_v63 = vld [vmem:[%s1990_s1 + $0xb0] sm:$0xff]  ;;  %v211_v2 = vld [vmem:[%s1990_s1 + $0xa0] sm:$0xff] }
  0xea   : > { %v1321_v4 = vpop.eup %1320  ;;  %v376_v5 = vpop.f32.mrf.mxu0 }
  0xeb   : > { %v377_v6 = vadd.f32 %v1731_v47, %v376_v5  ;;  %1127 = vmatmul.mubr.f32.vlgmr.msra.gmra.mxu1 %v1321_v4  ;;  %v1748_v9 = vpop.f32.mrf.mxu1  ;;  %v209_v4 = vld [vmem:[%s1990_s1 + $0x90] sm:$0xff]  ;;  %v1833_v5 = vld [vmem:[%s1991_s2 + $0x1] ss:$0 sm:$0xff] }
  0xec   : > { %v1051_v8 = vpop.f32.mrf.mxu0  ;;  %1129 = vmatprep.mubr.msk.f32.mxu1 %vm1459_vm0, %v1458_v1  ;;  %v427_v48 = vadd.f32 %v1731_v47, %v1748_v9 }
  0xed   : > { %1328 = vtanh.f32 %v377_v6  ;;  %v1081_v13 = vpop.f32.mrf.mxu1 }
  0xee   : > { %v1323_v10 = vpop.eup %1322  ;;  %v381_v11 = vpop.f32.mrf.mxu0 }
  0xef   : > { %v382_v12 = vadd.f32 %v1731_v47, %v381_v11  ;;  %1130 = vmatmul.mubr.f32.gmra.mxu1 %v1323_v10  ;;  %v431_v15 = vpop.f32.mrf.mxu1 }
  0xf0   : > { %v1054_v14 = vpop.f32.mrf.mxu0  ;;  %1132 = vmatprep.mubr.msk.f32.mxu1 %vm1459_vm0, %v1458_v1  ;;  %v432_v50 = vadd.f32 %v1731_v47, %v431_v15 }
  0xf1   : > { %1330 = vtanh.f32 %v382_v12  ;;  %v1084_v19 = vpop.f32.mrf.mxu1 }
  0xf2   : > { %v1325_v16 = vpop.eup %1324  ;;  %v386_v17 = vpop.f32.mrf.mxu0 }
  0xf3   : > { %v387_v18 = vadd.f32 %v1731_v47, %v386_v17  ;;  %1133 = vmatmul.mubr.f32.gmra.mxu1 %v1325_v16  ;;  %v436_v21 = vpop.f32.mrf.mxu1 }
  0xf4   : > { %v1057_v20 = vpop.f32.mrf.mxu0  ;;  %1135 = vmatprep.mubr.msk.f32.mxu1 %vm1459_vm0, %v1458_v1  ;;  %v437_v52 = vadd.f32 %v1731_v47, %v436_v21 }
  0xf5   : > { %1332 = vtanh.f32 %v387_v18  ;;  %v1087_v25 = vpop.f32.mrf.mxu1 }
  0xf6   : > { %v1327_v22 = vpop.eup %1326  ;;  %v391_v23 = vpop.f32.mrf.mxu0 }
  0xf7   : > { %v392_v24 = vadd.f32 %v1731_v47, %v391_v23  ;;  %1136 = vmatmul.mubr.f32.gmra.mxu1 %v1327_v22  ;;  %v441_v27 = vpop.f32.mrf.mxu1 }
  0xf8   : > { %v1060_v26 = vpop.f32.mrf.mxu0  ;;  %1138 = vmatprep.mubr.msk.f32.mxu1 %vm1459_vm0, %v1458_v1  ;;  %v442_v54 = vadd.f32 %v1731_v47, %v441_v27 }
  0xf9   : > { %1334 = vtanh.f32 %v392_v24  ;;  %v1090_v31 = vpop.f32.mrf.mxu1 }
  0xfa   : > { %v1329_v28 = vpop.eup %1328  ;;  %v396_v29 = vpop.f32.mrf.mxu0 }
  0xfb   : > { %v397_v30 = vadd.f32 %v1731_v47, %v396_v29  ;;  %1139 = vmatmul.mubr.f32.gmra.mxu1 %v1329_v28  ;;  %v446_v33 = vpop.f32.mrf.mxu1 }
  0xfc   : > { %v1063_v32 = vpop.f32.mrf.mxu0  ;;  %1141 = vmatprep.mubr.msk.f32.mxu1 %vm1459_vm0, %v1458_v1  ;;  %v447_v56 = vadd.f32 %v1731_v47, %v446_v33 }
  0xfd   : > { %1336 = vtanh.f32 %v397_v30  ;;  %v1093_v38 = vpop.f32.mrf.mxu1 }
  0xfe   : > { %v1331_v34 = vpop.eup %1330  ;;  %v401_v35 = vpop.f32.mrf.mxu0 }
  0xff   : > { %v402_v36 = vadd.f32 %v1731_v47, %v401_v35  ;;  %1142 = vmatmul.mubr.f32.gmra.mxu1 %v1331_v34  ;;  %v215_v47 = vld [vmem:[%s1990_s1 + $0xc0] sm:$0xff] }
 0x100   : > { %v1066_v39 = vpop.f32.mrf.mxu0  ;;  %1144 = vmatprep.mubr.msk.f32.mxu1 %vm1459_vm0, %v1458_v1  ;;  %1202 = vmatpush3.msra.mxu0 %v215_v47 }
 0x101   : > { %1338 = vtanh.f32 %v402_v36  ;;  %1203 = vmatprep.subr.mxu0 %v1458_v1 }
 0x102   : > { %v1333_v40 = vpop.eup %1332  ;;  %1340 = vtanh.f32 %v407_v37  ;;  %1204 = vmatpush3.msra.mxu0 %v214_v61 }
 0x103   : > { %1145 = vmatmul.mubr.f32.gmra.mxu1 %v1333_v40  ;;  %1342 = vtanh.f32 %v412_v41  ;;  %1205 = vmatprep.subr.mxu0 %v1458_v1 }
 0x104   : > { %1147 = vmatprep.mubr.msk.f32.mxu1 %vm1459_vm0, %v1458_v1  ;;  %1344 = vtanh.f32 %v417_v43  ;;  %1206 = vmatpush3.msra.mxu0 %v213_v63 }
 0x105   : > { %1346 = vtanh.f32 %v422_v45  ;;  %1207 = vmatprep.subr.mxu0 %v1458_v1 }
 0x106   : > { %v1335_v42 = vpop.eup %1334  ;;  %1348 = vtanh.f32 %v427_v48  ;;  %1208 = vmatpush3.msra.mxu0 %v212_v0 }
 0x107   : > { %1148 = vmatmul.mubr.f32.gmra.mxu1 %v1335_v42  ;;  %1350 = vtanh.f32 %v432_v50  ;;  %1209 = vmatprep.subr.mxu0 %v1458_v1 }
 0x108   : > { %1150 = vmatprep.mubr.msk.f32.mxu1 %vm1459_vm0, %v1458_v1  ;;  %1352 = vtanh.f32 %v437_v52  ;;  %1210 = vmatpush3.msra.mxu0 %v211_v2 }
 0x109   : > { %1354 = vtanh.f32 %v442_v54  ;;  %1211 = vmatprep.subr.mxu0 %v1458_v1 }
 0x10a   : > { %v1337_v44 = vpop.eup %1336  ;;  %1356 = vtanh.f32 %v447_v56  ;;  %1212 = vmatpush3.msra.mxu0 %v210_v3 }
 0x10b   : > { %1151 = vmatmul.mubr.f32.gmra.mxu1 %v1337_v44  ;;  %1213 = vmatprep.subr.mxu0 %v1458_v1 }
 0x10c   : > { %1153 = vmatprep.mubr.msk.f32.mxu1 %vm1459_vm0, %v1458_v1  ;;  %1214 = vmatpush3.msra.mxu0 %v209_v4 }
 0x10e   : > { %v1339_v46 = vpop.eup %1338 }
 0x10f   : > { %1154 = vmatmul.mubr.f32.gmra.mxu1 %v1339_v46  ;;  %v1341_v49 = vpop.eup %1340 }
 0x110   : > { %1156 = vmatprep.mubr.msk.f32.mxu1 %vm1459_vm0, %v1458_v1  ;;  %v1343_v51 = vpop.eup %1342 }
 0x111   : > { %v1345_v53 = vpop.eup %1344 }
 0x112   : > { %v1347_v55 = vpop.eup %1346 }
 0x113   : > { %1157 = vmatmul.mubr.f32.gmra.mxu1 %v1341_v49  ;;  %v1349_v57 = vpop.eup %1348 }
 0x114   : > { %1159 = vmatprep.mubr.msk.f32.mxu1 %vm1459_vm0, %v1458_v1  ;;  %v1351_v58 = vpop.eup %1350 }
 0x115   : > { %v1353_v59 = vpop.eup %1352 }
 0x116   : > { %v1355_v60 = vpop.eup %1354 }
 0x117   : > { %1160 = vmatmul.mubr.f32.gmra.mxu1 %v1343_v51  ;;  %v1357_v62 = vpop.eup %1356 }
 0x118   : > { %1162 = vmatprep.mubr.msk.f32.mxu1 %vm1459_vm0, %v1458_v1 }
 0x11b   : > { %1163 = vmatmul.mubr.f32.gmra.mxu1 %v1345_v53 }
 0x11c   : > { %1165 = vmatprep.mubr.msk.f32.mxu1 %vm1459_vm0, %v1458_v1 }
 0x11f   : > { %1166 = vmatmul.mubr.f32.gmra.mxu1 %v1347_v55 }
 0x120   : > { %1168 = vmatprep.mubr.msk.f32.mxu1 %vm1459_vm0, %v1458_v1 }
 0x123   : > { %1169 = vmatmul.mubr.f32.gmra.mxu1 %v1349_v57 }
 0x124   : > { %1171 = vmatprep.mubr.msk.f32.mxu1 %vm1459_vm0, %v1458_v1 }
 0x127   : > { %1172 = vmatmul.mubr.f32.gmra.mxu1 %v1351_v58 }
 0x128   : > { %1174 = vmatprep.mubr.msk.f32.mxu1 %vm1459_vm0, %v1458_v1 }
 0x12b   : > { %1175 = vmatmul.mubr.f32.gmra.mxu1 %v1353_v59 }
 0x12c   : > { %1177 = vmatprep.mubr.msk.f32.mxu1 %vm1459_vm0, %v1458_v1 }
 0x12f   : > { %1178 = vmatmul.mubr.f32.gmra.mxu1 %v1355_v60 }
 0x130   : > { %1180 = vmatprep.mubr.msk.f32.mxu1 %vm1459_vm0, %v1458_v1 }
 0x133   : > { %1181 = vmatmul.mubr.f32.gmra.mxu1 %v1357_v62 }
 0x1ab   : > { %v539_v6 = vpop.f32.mrf.mxu1 }
 0x1ac   : > { %v540_v7 = vadd.f32 %v1833_v5, %v539_v6 }
 0x1ad   : > { %v1128_v8 = vpop.f32.mrf.mxu1 }
 0x1ae   : > { %1358 = vtanh.f32 %v540_v7 }
 0x1af   : > { %v544_v9 = vpop.f32.mrf.mxu1 }
 0x1b0   : > { %v545_v10 = vadd.f32 %v1833_v5, %v544_v9 }
 0x1b1   : > { %v1131_v11 = vpop.f32.mrf.mxu1 }
 0x1b2   : > { %1360 = vtanh.f32 %v545_v10 }
 0x1b3   : > { %v549_v12 = vpop.f32.mrf.mxu1 }
 0x1b4   : > { %v550_v13 = vadd.f32 %v1833_v5, %v549_v12 }
 0x1b5   : > { %v1134_v14 = vpop.f32.mrf.mxu1 }
 0x1b6   : > { %1362 = vtanh.f32 %v550_v13 }
 0x1b7   : > { %v554_v15 = vpop.f32.mrf.mxu1 }
 0x1b8   : > { %v555_v16 = vadd.f32 %v1833_v5, %v554_v15 }
 0x1b9   : > { %v1137_v17 = vpop.f32.mrf.mxu1 }
 0x1ba   : > { %1364 = vtanh.f32 %v555_v16 }
 0x1bb   : > { %v1359_v18 = vpop.eup %1358  ;;  %v559_v19 = vpop.f32.mrf.mxu1 }
 0x1bc   : > { %v560_v20 = vadd.f32 %v1833_v5, %v559_v19  ;;  %1216 = vmatmul.mubr.f32.vlgmr.msra.gmra.mxu0 %v1359_v18  ;;  %v1896_v19 = vld [vmem:[%s1991_s2 + $0x2] ss:$0 sm:$0xff] }
 0x1bd   : > { %v1140_v21 = vpop.f32.mrf.mxu1  ;;  %1218 = vmatprep.mubr.msk.f32.mxu0 %vm1459_vm0, %v1458_v1 }
 0x1be   : > { %1366 = vtanh.f32 %v560_v20 }
 0x1bf   : > { %v1361_v22 = vpop.eup %1360  ;;  %v564_v23 = vpop.f32.mrf.mxu1 }
 0x1c0   : > { %v565_v24 = vadd.f32 %v1833_v5, %v564_v23  ;;  %1219 = vmatmul.mubr.f32.gmra.mxu0 %v1361_v22 }
 0x1c1   : > { %v1143_v25 = vpop.f32.mrf.mxu1  ;;  %1221 = vmatprep.mubr.msk.f32.mxu0 %vm1459_vm0, %v1458_v1 }
 0x1c2   : > { %1368 = vtanh.f32 %v565_v24 }
 0x1c3   : > { %v1363_v26 = vpop.eup %1362  ;;  %v569_v27 = vpop.f32.mrf.mxu1 }
 0x1c4   : > { %v570_v28 = vadd.f32 %v1833_v5, %v569_v27  ;;  %1222 = vmatmul.mubr.f32.gmra.mxu0 %v1363_v26 }
 0x1c5   : > { %v1146_v29 = vpop.f32.mrf.mxu1  ;;  %1224 = vmatprep.mubr.msk.f32.mxu0 %vm1459_vm0, %v1458_v1 }
 0x1c6   : > { %1370 = vtanh.f32 %v570_v28 }
 0x1c7   : > { %v1365_v30 = vpop.eup %1364  ;;  %v574_v31 = vpop.f32.mrf.mxu1 }
 0x1c8   : > { %v575_v32 = vadd.f32 %v1833_v5, %v574_v31  ;;  %1225 = vmatmul.mubr.f32.gmra.mxu0 %v1365_v30 }
 0x1c9   : > { %v1149_v33 = vpop.f32.mrf.mxu1  ;;  %1227 = vmatprep.mubr.msk.f32.mxu0 %vm1459_vm0, %v1458_v1 }
 0x1ca   : > { %1372 = vtanh.f32 %v575_v32 }
 0x1cb   : > { %v1367_v34 = vpop.eup %1366  ;;  %v579_v35 = vpop.f32.mrf.mxu1 }
 0x1cc   : > { %v580_v36 = vadd.f32 %v1833_v5, %v579_v35  ;;  %1228 = vmatmul.mubr.f32.gmra.mxu0 %v1367_v34 }
 0x1cd   : > { %v1152_v37 = vpop.f32.mrf.mxu1  ;;  %1230 = vmatprep.mubr.msk.f32.mxu0 %vm1459_vm0, %v1458_v1 }
 0x1ce   : > { %1374 = vtanh.f32 %v580_v36 }
 0x1cf   : > { %v1369_v38 = vpop.eup %1368  ;;  %v584_v39 = vpop.f32.mrf.mxu1 }
 0x1d0   : > { %v585_v40 = vadd.f32 %v1833_v5, %v584_v39  ;;  %1231 = vmatmul.mubr.f32.gmra.mxu0 %v1369_v38 }
 0x1d1   : > { %v1155_v41 = vpop.f32.mrf.mxu1  ;;  %1233 = vmatprep.mubr.msk.f32.mxu0 %vm1459_vm0, %v1458_v1 }
 0x1d2   : > { %1376 = vtanh.f32 %v585_v40 }
 0x1d3   : > { %v1371_v42 = vpop.eup %1370  ;;  %v589_v43 = vpop.f32.mrf.mxu1 }
 0x1d4   : > { %v590_v44 = vadd.f32 %v1833_v5, %v589_v43  ;;  %1234 = vmatmul.mubr.f32.gmra.mxu0 %v1371_v42 }
 0x1d5   : > { %v1158_v45 = vpop.f32.mrf.mxu1  ;;  %1236 = vmatprep.mubr.msk.f32.mxu0 %vm1459_vm0, %v1458_v1 }
 0x1d6   : > { %1378 = vtanh.f32 %v590_v44 }
 0x1d7   : > { %v1373_v46 = vpop.eup %1372  ;;  %v594_v48 = vpop.f32.mrf.mxu1 }
 0x1d8   : > { %v595_v49 = vadd.f32 %v1833_v5, %v594_v48  ;;  %1237 = vmatmul.mubr.f32.gmra.mxu0 %v1373_v46 }
 0x1d9   : > { %v1161_v50 = vpop.f32.mrf.mxu1  ;;  %1239 = vmatprep.mubr.msk.f32.mxu0 %vm1459_vm0, %v1458_v1 }
 0x1da   : > { %1380 = vtanh.f32 %v595_v49 }
 0x1db   : > { %v1375_v51 = vpop.eup %1374  ;;  %v599_v52 = vpop.f32.mrf.mxu1 }
 0x1dc   : > { %v600_v53 = vadd.f32 %v1833_v5, %v599_v52  ;;  %1240 = vmatmul.mubr.f32.gmra.mxu0 %v1375_v51 }
 0x1dd   : > { %v1164_v54 = vpop.f32.mrf.mxu1  ;;  %1242 = vmatprep.mubr.msk.f32.mxu0 %vm1459_vm0, %v1458_v1 }
 0x1de   : > { %1382 = vtanh.f32 %v600_v53 }
 0x1df   : > { %v1377_v55 = vpop.eup %1376  ;;  %v604_v56 = vpop.f32.mrf.mxu1 }
 0x1e0   : > { %v605_v57 = vadd.f32 %v1833_v5, %v604_v56  ;;  %1243 = vmatmul.mubr.f32.gmra.mxu0 %v1377_v55 }
 0x1e1   : > { %v1167_v58 = vpop.f32.mrf.mxu1  ;;  %1245 = vmatprep.mubr.msk.f32.mxu0 %vm1459_vm0, %v1458_v1 }
 0x1e2   : > { %1384 = vtanh.f32 %v605_v57 }
 0x1e3   : > { %v1379_v59 = vpop.eup %1378  ;;  %v609_v60 = vpop.f32.mrf.mxu1 }
 0x1e4   : > { %v610_v47 = vadd.f32 %v1833_v5, %v609_v60  ;;  %1246 = vmatmul.mubr.f32.gmra.mxu0 %v1379_v59 }
 0x1e5   : > { %v1170_v61 = vpop.f32.mrf.mxu1  ;;  %1248 = vmatprep.mubr.msk.f32.mxu0 %vm1459_vm0, %v1458_v1 }
 0x1e6   : > { %1386 = vtanh.f32 %v610_v47 }
 0x1e7   : > { %v1381_v62 = vpop.eup %1380  ;;  %v614_v63 = vpop.f32.mrf.mxu1 }
 0x1e8   : > { %v615_v0 = vadd.f32 %v1833_v5, %v614_v63  ;;  %1249 = vmatmul.mubr.f32.gmra.mxu0 %v1381_v62 }
 0x1e9   : > { %v1173_v2 = vpop.f32.mrf.mxu1  ;;  %1251 = vmatprep.mubr.msk.f32.mxu0 %vm1459_vm0, %v1458_v1 }
 0x1ea   : > { %1388 = vtanh.f32 %v615_v0 }
 0x1eb   : > { %v1383_v3 = vpop.eup %1382  ;;  %v619_v4 = vpop.f32.mrf.mxu1 }
 0x1ec   : > { %v620_v6 = vadd.f32 %v1833_v5, %v619_v4  ;;  %1252 = vmatmul.mubr.f32.gmra.mxu0 %v1383_v3 }
 0x1ed   : > { %v1176_v7 = vpop.f32.mrf.mxu1  ;;  %1254 = vmatprep.mubr.msk.f32.mxu0 %vm1459_vm0, %v1458_v1 }
 0x1ee   : > { %1390 = vtanh.f32 %v620_v6 }
 0x1ef   : > { %v1385_v8 = vpop.eup %1384  ;;  %v624_v9 = vpop.f32.mrf.mxu1 }
 0x1f0   : > { %v625_v10 = vadd.f32 %v1833_v5, %v624_v9  ;;  %1255 = vmatmul.mubr.f32.gmra.mxu0 %v1385_v8 }
 0x1f1   : > { %v1179_v11 = vpop.f32.mrf.mxu1  ;;  %1257 = vmatprep.mubr.msk.f32.mxu0 %vm1459_vm0, %v1458_v1 }
 0x1f2   : > { %1392 = vtanh.f32 %v625_v10 }
 0x1f3   : > { %v1387_v12 = vpop.eup %1386  ;;  %v629_v13 = vpop.f32.mrf.mxu1 }
 0x1f4   : > { %v630_v14 = vadd.f32 %v1833_v5, %v629_v13  ;;  %1258 = vmatmul.mubr.f32.gmra.mxu0 %v1387_v12 }
 0x1f5   : > { %v1182_v15 = vpop.f32.mrf.mxu1  ;;  %1260 = vmatprep.mubr.msk.f32.mxu0 %vm1459_vm0, %v1458_v1 }
 0x1f6   : > { %1394 = vtanh.f32 %v630_v14 }
 0x1f7   : > { %v1389_v16 = vpop.eup %1388 }
 0x1f8   : > { %1261 = vmatmul.mubr.f32.gmra.mxu0 %v1389_v16 }
 0x1f9   : > { %1263 = vmatprep.mubr.msk.f32.mxu0 %vm1459_vm0, %v1458_v1 }
 0x1fb   : > { %v1391_v17 = vpop.eup %1390 }
 0x1fc   : > { %1264 = vmatmul.mubr.f32.gmra.mxu0 %v1391_v17 }
 0x1fd   : > { %1266 = vmatprep.mubr.msk.f32.mxu0 %vm1459_vm0, %v1458_v1 }
 0x1ff   : > { %v1393_v18 = vpop.eup %1392 }
 0x200   : > { %1267 = vmatmul.mubr.f32.gmra.mxu0 %v1393_v18 }
 0x201   : > { %1269 = vmatprep.mubr.msk.f32.mxu0 %vm1459_vm0, %v1458_v1 }
 0x203   : > { %v1395_v5 = vpop.eup %1394 }
 0x204   : > { %1270 = vmatmul.mubr.f32.gmra.mxu0 %v1395_v5 }
 0x27c   : > { %v722_v20 = vpop.f32.mrf.mxu0 }
 0x27d   : > { %v723_v21 = vadd.f32 %v1896_v19, %v722_v20 }
 0x27e   : > { %v1217_v22 = vpop.f32.mrf.mxu0 }
 0x27f   : > { %816 = vst [vmem:[%s1899_s5] sm:$0xff] %v723_v21 }
 0x280   : > { %v727_v1 = vpop.f32.mrf.mxu0 }
 0x281   : > { %v728_v23 = vadd.f32 %v1896_v19, %v727_v1 }
 0x282   : > { %v1220_v24 = vpop.f32.mrf.mxu0 }
 0x283   : > { %817 = vst [vmem:[%s1899_s5 + $0x8] sm:$0xff] %v728_v23 }
 0x284   : > { %v732_v25 = vpop.f32.mrf.mxu0 }
 0x285   : > { %v733_v26 = vadd.f32 %v1896_v19, %v732_v25 }
 0x286   : > { %v1223_v27 = vpop.f32.mrf.mxu0 }
 0x287   : > { %818 = vst [vmem:[%s1899_s5 + $0x10] sm:$0xff] %v733_v26 }
 0x288   : > { %v737_v28 = vpop.f32.mrf.mxu0 }
 0x289   : > { %v738_v29 = vadd.f32 %v1896_v19, %v737_v28 }
 0x28a   : > { %v1226_v30 = vpop.f32.mrf.mxu0 }
 0x28b   : > { %819 = vst [vmem:[%s1899_s5 + $0x18] sm:$0xff] %v738_v29 }
 0x28c   : > { %v742_v31 = vpop.f32.mrf.mxu0 }
 0x28d   : > { %v743_v32 = vadd.f32 %v1896_v19, %v742_v31 }
 0x28e   : > { %v1229_v33 = vpop.f32.mrf.mxu0 }
 0x28f   : > { %820 = vst [vmem:[%s1899_s5 + $0x20] sm:$0xff] %v743_v32 }
 0x290   : > { %v747_v34 = vpop.f32.mrf.mxu0 }
 0x291   : > { %v748_v35 = vadd.f32 %v1896_v19, %v747_v34 }
 0x292   : > { %v1232_v36 = vpop.f32.mrf.mxu0 }
 0x293   : > { %821 = vst [vmem:[%s1899_s5 + $0x28] sm:$0xff] %v748_v35 }
 0x294   : > { %v752_v37 = vpop.f32.mrf.mxu0 }
 0x295   : > { %v753_v38 = vadd.f32 %v1896_v19, %v752_v37 }
 0x296   : > { %v1235_v39 = vpop.f32.mrf.mxu0 }
 0x297   : > { %822 = vst [vmem:[%s1899_s5 + $0x30] sm:$0xff] %v753_v38 }
 0x298   : > { %v757_v40 = vpop.f32.mrf.mxu0 }
 0x299   : > { %v758_v41 = vadd.f32 %v1896_v19, %v757_v40 }
 0x29a   : > { %v1238_v42 = vpop.f32.mrf.mxu0 }
 0x29b   : > { %823 = vst [vmem:[%s1899_s5 + $0x38] sm:$0xff] %v758_v41 }
 0x29c   : > { %v762_v43 = vpop.f32.mrf.mxu0 }
 0x29d   : > { %v763_v44 = vadd.f32 %v1896_v19, %v762_v43 }
 0x29e   : > { %v1241_v45 = vpop.f32.mrf.mxu0 }
 0x29f   : > { %824 = vst [vmem:[%s1899_s5 + $0x40] sm:$0xff] %v763_v44 }
 0x2a0   : > { %v767_v46 = vpop.f32.mrf.mxu0 }
 0x2a1   : > { %v768_v48 = vadd.f32 %v1896_v19, %v767_v46 }
 0x2a2   : > { %v1244_v49 = vpop.f32.mrf.mxu0 }
 0x2a3   : > { %825 = vst [vmem:[%s1899_s5 + $0x48] sm:$0xff] %v768_v48 }
 0x2a4   : > { %v772_v50 = vpop.f32.mrf.mxu0 }
 0x2a5   : > { %v773_v51 = vadd.f32 %v1896_v19, %v772_v50 }
 0x2a6   : > { %v1247_v52 = vpop.f32.mrf.mxu0 }
 0x2a7   : > { %826 = vst [vmem:[%s1899_s5 + $0x50] sm:$0xff] %v773_v51 }
 0x2a8   : > { %v777_v53 = vpop.f32.mrf.mxu0 }
 0x2a9   : > { %v778_v54 = vadd.f32 %v1896_v19, %v777_v53 }
 0x2aa   : > { %v1250_v55 = vpop.f32.mrf.mxu0 }
 0x2ab   : > { %827 = vst [vmem:[%s1899_s5 + $0x58] sm:$0xff] %v778_v54 }
 0x2ac   : > { %v782_v56 = vpop.f32.mrf.mxu0 }
 0x2ad   : > { %v783_v57 = vadd.f32 %v1896_v19, %v782_v56 }
 0x2ae   : > { %v1253_v58 = vpop.f32.mrf.mxu0 }
 0x2af   : > { %828 = vst [vmem:[%s1899_s5 + $0x60] sm:$0xff] %v783_v57 }
 0x2b0   : > { %v787_v59 = vpop.f32.mrf.mxu0 }
 0x2b1   : > { %v788_v60 = vadd.f32 %v1896_v19, %v787_v59 }
 0x2b2   : > { %v1256_v47 = vpop.f32.mrf.mxu0 }
 0x2b3   : > { %829 = vst [vmem:[%s1899_s5 + $0x68] sm:$0xff] %v788_v60 }
 0x2b4   : > { %v792_v61 = vpop.f32.mrf.mxu0 }
 0x2b5   : > { %v793_v62 = vadd.f32 %v1896_v19, %v792_v61 }
 0x2b6   : > { %v1259_v63 = vpop.f32.mrf.mxu0 }
 0x2b7   : > { %830 = vst [vmem:[%s1899_s5 + $0x70] sm:$0xff] %v793_v62 }
 0x2b8   : > { %v797_v0 = vpop.f32.mrf.mxu0 }
 0x2b9   : > { %v798_v2 = vadd.f32 %v1896_v19, %v797_v0 }
 0x2ba   : > { %v1262_v3 = vpop.f32.mrf.mxu0 }
 0x2bb   : > { %831 = vst [vmem:[%s1899_s5 + $0x78] sm:$0xff] %v798_v2 }
 0x2bc   : > { %v802_v4 = vpop.f32.mrf.mxu0 }
 0x2bd   : > { %v803_v6 = vadd.f32 %v1896_v19, %v802_v4 }
 0x2be   : > { %v1265_v7 = vpop.f32.mrf.mxu0 }
 0x2bf   : > { %832 = vst [vmem:[%s1899_s5 + $0x80] sm:$0xff] %v803_v6 }
 0x2c0   : > { %v807_v8 = vpop.f32.mrf.mxu0 }
 0x2c1   : > { %v808_v9 = vadd.f32 %v1896_v19, %v807_v8 }
 0x2c2   : > { %v1268_v10 = vpop.f32.mrf.mxu0 }
 0x2c3   : > { %833 = vst [vmem:[%s1899_s5 + $0x88] sm:$0xff] %v808_v9 }
 0x2c4   : > { %v812_v11 = vpop.f32.mrf.mxu0 }
 0x2c5   : > { %v813_v12 = vadd.f32 %v1896_v19, %v812_v11 }
 0x2c6   : > { %v1271_v13 = vpop.f32.mrf.mxu0 }
 0x2c7   : > { %834 = vst [vmem:[%s1899_s5 + $0x90] sm:$0xff] %v813_v12 }
 0x2c8   : > { %1409 = shalt.err (!%p1406_p3)
}
 0x2c9   : > { %s1410_s25 = scalar_lea.hbm %s1941_s11, 2432  ;;  %s1414_s28 = scalar_lea.hbm %s1992_s3, 4864 }
 0x2ca   : > { %p1411_p4 = scmp.ne.s32.totalorder %s1941_s11, %s1410_s25  ;;  %p1415_p9 = scmp.lt.s32.totalorder %s1941_s11, %s1992_s3 }
 0x2cb   : > { %p1416_p10 = scmp.lt.s32.totalorder %s1414_s28, %s1410_s25 }
 0x2cc   : > { %p1412_p7 = pnand %p1411_p4, %p1521_p5 }
 0x2cd   : > { %p1417_p11 = por %p1416_p10, %p1415_p9 }
 0x2ce   : > { %p1413_p8 = pneg %p1412_p7 }
 0x2d0   : > { %p1418_p12 = pnand %p1417_p11, %p1413_p8 }
 0x2d2   : > { %1421 = shalt.err (!%p1418_p12)
}
 0x2d3   : > { %s1461_s4 = smov 128   ;;  %s1462_s6 = smov 8  }
 0x2d4   : > { %1277 = dma.vmem_to_hbm [thread:$0]  (%p1521_p5), %s1943_s8, 2432, %s1941_s11, %s1949_s16, %s1461_s4, %s1461_s4, %s1462_s6  }
 0x2d5 PF: > { %p1283_p13 = scmp.ge.s32.totalorder %s1456_s15, 2  ;;  %s864_s5 = sand.u32 1, %s1444_s12  }
 0x2d6   : > { %s865_s7 = scalar_lea.sflag [#allocation3], %s864_s5 }
 0x2d7   : > { %p1280_p0 = pnand %p1283_p13, %p1525_p6 }
 0x2d9   : > { %p1281_p1 = pneg %p1280_p0 }
 0x2db   : > { %1439 = dma.done.wait (%p1281_p1), %s865_s7, 2432  }
 0x2dc   : > { %1441 = vsyncadd (%p1281_p1), %s865_s7, 4294964864  ;;  %p13_p2 = scmp.ge.s32.totalorder %s1508_s18, 4   ;;  %s1995_s12 = smov %s1448_s13 }
 0x2dd   : > { %s1996_s13 = smov %s1452_s14  ;;  %s1997_s14 = smov %s1519_s21 }
 0x2de   : > { %s1998_s15 = smov %s1508_s18  ;;  %15 = sbr.rel (!%p13_p2) target bundleno = 3 (0x3), region = 67 }
 0x2e3   :  { %870 = vsyncpa [#allocation3], 1 }
 0x2e4   :  { %872 = vsyncpa [#allocation3 + $0x1], 1 }

</bundles_post_ra>
